<compile_context>
chip_gen: v7x
topology: tpu7x:2x2x1
jax: 0.10.0
libtpu: 0.0.40
codegen_flags: <defaults>
</compile_context>

<pallas_src>
import functools

import jax
import jax.numpy as jnp
from jax.experimental import pallas as pl
from jax.experimental.pallas import tpu as pltpu


# ----------------------------------------------------------------------------
# Kernels
# ----------------------------------------------------------------------------
def fused_se_kernel(x_ref, w1_ref, w2_ref, o_ref, *, inv_hw):
    """Single-pass SE: pool + excite + scale for one batch element.

    x_ref/o_ref block: (1, C, HW); w1_ref: (Cmid, C); w2_ref: (C, Cmid).
    Reads x once from HBM, writes the scaled output once.
    """
    x = x_ref[0]                                               # (C, HW) native dtype
    # Reduction over HW as a matmul with a ones vector (MXU, not XLU); native
    # dtype inputs, f32 accumulation.
    ones = jnp.ones((x.shape[1], 1), dtype=x.dtype)            # (HW, 1)
    acc = jnp.dot(x, ones, preferred_element_type=jnp.float32)  # (C, 1)
    mean = acc * inv_hw                                        # (C, 1) f32

    # Excitation with column vectors: sigmoid(W2 @ relu(W1 @ mean)).
    w1 = w1_ref[...].astype(jnp.float32)                       # (Cmid, C), tiny
    w2 = w2_ref[...].astype(jnp.float32)                       # (C, Cmid), tiny
    h = jnp.maximum(jnp.dot(w1, mean, preferred_element_type=jnp.float32), 0.0)
    g = jax.nn.sigmoid(jnp.dot(w2, h, preferred_element_type=jnp.float32))  # (C, 1)

    o_ref[0] = (x * g.astype(x.dtype)).astype(o_ref.dtype)


def pool_excite_kernel(x_ref, w1_ref, w2_ref, g_ref, *, hw, t_hw, inv_hw):
    """Global average pool over HW tiles + fused excitation epilogue.

    x_ref block: (1, C, t_hw); g_ref block: (1, C, 1) f32 (resident across t,
    used as the accumulator).  Grid = (B, n_t), t is the reduction axis.
    """
    t = pl.program_id(1)
    n_t = pl.num_programs(1)

    @pl.when(t == 0)
    def _():
        g_ref[...] = jnp.zeros_like(g_ref)

    x = x_ref[0]                                               # (C, t_hw) native dtype
    if hw % t_hw != 0:
        # Mask the ragged tail of the last block (out-of-bounds reads are
        # undefined); jnp.where keeps the native dtype and ignores NaN garbage.
        col = jax.lax.broadcasted_iota(jnp.int32, x.shape, 1) + t * t_hw
        x = jnp.where(col < hw, x, jnp.zeros_like(x))

    ones = jnp.ones((x.shape[1], 1), dtype=x.dtype)            # (t_hw, 1)
    g_ref[0] += jnp.dot(x, ones, preferred_element_type=jnp.float32)

    @pl.when(t == n_t - 1)
    def _():
        mean = g_ref[0] * inv_hw                               # (C, 1) f32
        w1 = w1_ref[...].astype(jnp.float32)                   # (Cmid, C)
        w2 = w2_ref[...].astype(jnp.float32)                   # (C, Cmid)
        h = jnp.maximum(jnp.dot(w1, mean, preferred_element_type=jnp.float32), 0.0)
        g_ref[0] = jax.nn.sigmoid(
            jnp.dot(w2, h, preferred_element_type=jnp.float32))


def scale_kernel(x_ref, g_ref, o_ref):
    """o = x * gate (per-channel broadcast), in x's native dtype.

    x_ref/o_ref block: (1, C, t_hw); g_ref block: (1, C, 1) f32.
    Out-of-bounds lanes of the last block are computed but dropped by Pallas.
    """
    x = x_ref[0]                                               # (C, t_hw)
    g = g_ref[0].astype(x.dtype)                               # (C, 1)
    o_ref[0] = (x * g).astype(o_ref.dtype)


# ----------------------------------------------------------------------------
# Wrapper
# ----------------------------------------------------------------------------
def _round_up(a, b):
    return (a + b - 1) // b * b


_VMEM_LIMIT = 32 * 1024 * 1024        # safe on v5e/v6e/v7x
_BLOCK_BYTES = 4 * 1024 * 1024        # per (C, t_hw) block cap for the 2-pass path
_FUSED_BUDGET = 24 * 1024 * 1024      # double-buffered in+out budget for 1-pass path


def se_layer_2d(x, w1, w2, *, single_pass=None):
    """SELayer2D forward.

    x : (B, C, H, W)
    w1: (C//r, C)  -- PyTorch Linear(c, c//r, bias=False).weight layout
    w2: (C, C//r)  -- PyTorch Linear(c//r, c, bias=False).weight layout
    """
    B, C, H, W = x.shape
    HW = H * W
    Cmid = w1.shape[0]
    itemsize = jnp.dtype(x.dtype).itemsize
    inv_hw = 1.0 / float(HW)

    x_r = x.reshape(B, C, HW)

    slab_bytes = C * HW * itemsize
    if single_pass is None:
        # in + out, double-buffered, plus the (tiny) weights.
        single_pass = (4 * slab_bytes + 2 * C * Cmid * 4) <= _FUSED_BUDGET

    if single_pass:
        # ---- fused single-pass: read x once, write once ---------------------
        out = pl.pallas_call(
            functools.partial(fused_se_kernel, inv_hw=inv_hw),
            out_shape=jax.ShapeDtypeStruct((B, C, HW), x.dtype),
            grid_spec=pltpu.PrefetchScalarGridSpec(
                num_scalar_prefetch=0,
                grid=(B,),
                in_specs=[
                    pl.BlockSpec((1, C, HW), lambda b: (b, 0, 0)),
                    pl.BlockSpec((Cmid, C), lambda b: (0, 0)),
                    pl.BlockSpec((C, Cmid), lambda b: (0, 0)),
                ],
                out_specs=pl.BlockSpec((1, C, HW), lambda b: (b, 0, 0)),
            ),
            compiler_params=pltpu.CompilerParams(
                dimension_semantics=("parallel",),
                vmem_limit_bytes=_VMEM_LIMIT),
        )(x_r, w1, w2)
        return out.reshape(B, C, H, W)

    # ---- two-pass path ------------------------------------------------------
    # Lane-dense 128-multiple HW tile, ~4 MiB per (C, t_hw) block.  The scale
    # pass (in + out, double-buffered) then peaks around 4x block = 16 MiB,
    # inside the explicit 32 MiB VMEM limit on all generations.
    max_t = max(512, _BLOCK_BYTES // max(1, C * itemsize))
    max_t = max(128, (max_t // 128) * 128)
    t_hw = min(max_t, _round_up(HW, 128))
    n_t = pl.cdiv(HW, t_hw)

    # pass 1: global average pool + fused excitation -> gates (B, C, 1) f32
    gates = pl.pallas_call(
        functools.partial(pool_excite_kernel, hw=HW, t_hw=t_hw, inv_hw=inv_hw),
        out_shape=jax.ShapeDtypeStruct((B, C, 1), jnp.float32),
        grid_spec=pltpu.PrefetchScalarGridSpec(
            num_scalar_prefetch=0,
            grid=(B, n_t),
            in_specs=[
                pl.BlockSpec((1, C, t_hw), lambda b, t: (b, 0, t)),
                pl.BlockSpec((Cmid, C), lambda b, t: (0, 0)),
                pl.BlockSpec((C, Cmid), lambda b, t: (0, 0)),
            ],
            out_specs=pl.BlockSpec((1, C, 1), lambda b, t: (b, 0, 0)),
        ),
        compiler_params=pltpu.CompilerParams(
            dimension_semantics=("parallel", "arbitrary"),
            vmem_limit_bytes=_VMEM_LIMIT),
    )(x_r, w1, w2)

    # pass 2: scale x by the per-channel gates (native dtype, no aliasing)
    out = pl.pallas_call(
        scale_kernel,
        out_shape=jax.ShapeDtypeStruct((B, C, HW), x.dtype),
        grid_spec=pltpu.PrefetchScalarGridSpec(
            num_scalar_prefetch=0,
            grid=(B, n_t),
            in_specs=[
                pl.BlockSpec((1, C, t_hw), lambda b, t: (b, 0, t)),
                pl.BlockSpec((1, C, 1), lambda b, t: (b, 0, 0)),
            ],
            out_specs=pl.BlockSpec((1, C, t_hw), lambda b, t: (b, 0, t)),
        ),
        compiler_params=pltpu.CompilerParams(
            dimension_semantics=("parallel", "parallel"),
            vmem_limit_bytes=_VMEM_LIMIT),
    )(x_r, gates)

    return out.reshape(B, C, H, W)


def se_layer_2d_ref(x, w1, w2):
    """Pure-JAX reference matching the PyTorch SELayer2D forward."""
    y = jnp.mean(x.astype(jnp.float32), axis=(2, 3))           # (B, C)
    h = jnp.maximum(y @ w1.T, 0.0)                             # (B, Cmid)
    s = jax.nn.sigmoid(h @ w2.T)                               # (B, C)
    return (x.astype(jnp.float32) * s[:, :, None, None]).astype(x.dtype)


if __name__ == "__main__":
    B, C, H, W = 2, 4, 16, 16
    r = 1
    Cmid = C // r

    key = jax.random.PRNGKey(0)
    kx, kw1, kw2, kx2 = jax.random.split(key, 4)

    x = jax.random.normal(kx, (B, C, H, W), dtype=jnp.float32)
    # PyTorch Linear weight layouts: (Cmid, C) and (C, Cmid).
    w1 = (jax.random.normal(kw1, (Cmid, C), dtype=jnp.float32)
          * (1.0 / jnp.sqrt(C)))
    w2 = (jax.random.normal(kw2, (C, Cmid), dtype=jnp.float32)
          * (1.0 / jnp.sqrt(Cmid)))

    fused_fn = jax.jit(functools.partial(se_layer_2d, single_pass=True))
    twopass_fn = jax.jit(functools.partial(se_layer_2d, single_pass=False))

    ref = se_layer_2d_ref(x, w1, w2)
    out_fused = jax.block_until_ready(fused_fn(x, w1, w2))
    out_two = jax.block_until_ready(twopass_fn(x, w1, w2))
    assert out_fused.shape == (B, C, H, W)
    assert jnp.allclose(out_fused, ref, atol=1e-5, rtol=1e-5), "fused mismatch"
    assert jnp.allclose(out_two, ref, atol=1e-5, rtol=1e-5), "two-pass mismatch"

    # Ragged spatial size (HW not a multiple of 128) exercises the in-kernel
    # tail masking and Pallas dropping OOB writes of the last block.
    Hr = Wr = 13
    xr = jax.random.normal(kx2, (B, C, Hr, Wr), dtype=jnp.float32)
    ref_r = se_layer_2d_ref(xr, w1, w2)
    out_r_two = jax.block_until_ready(twopass_fn(xr, w1, w2))
    out_r_fused = jax.block_until_ready(fused_fn(xr, w1, w2))
    assert jnp.allclose(out_r_two, ref_r, atol=1e-5, rtol=1e-5), "ragged two-pass mismatch"
    assert jnp.allclose(out_r_fused, ref_r, atol=1e-5, rtol=1e-5), "ragged fused mismatch"

    print("KERNEL_OK")
</pallas_src>

<mosaic_0001>
module attributes {stable_mosaic.version = 11 : i64} {
  func.func @fused_se_kernel(%arg0: i32, %arg1: memref<1x4x256xf32, #tpu.memory_space<vmem>>, %arg2: memref<4x4xf32, #tpu.memory_space<vmem>>, %arg3: memref<4x4xf32, #tpu.memory_space<vmem>>, %arg4: memref<1x4x256xf32, #tpu.memory_space<vmem>>) attributes {dimension_semantics = [#tpu.dimension_semantics<parallel>], iteration_bounds = array<i64: 2>, scalar_prefetch = 0 : i64, scratch_operands = 0 : i64, tpu.core_type = #tpu.core_type<tc>, window_params = [{transform_indices = @transform_0, window_bounds = array<i64: 1, 4, 256>}, {pipeline_mode = #tpu.pipeline_mode<synchronous>, transform_indices = @transform_1, window_bounds = array<i64: 4, 4>}, {pipeline_mode = #tpu.pipeline_mode<synchronous>, transform_indices = @transform_2, window_bounds = array<i64: 4, 4>}, {transform_indices = @transform_3, window_bounds = array<i64: 1, 4, 256>}]} {
    %c0 = arith.constant 0 : index
    %c0_0 = arith.constant 0 : index
    %c0_1 = arith.constant 0 : index
    %0 = vector.load %arg1[%c0, %c0_0, %c0_1] : memref<1x4x256xf32, #tpu.memory_space<vmem>>, vector<1x4x256xf32>
    %1 = vector.shape_cast %0 : vector<1x4x256xf32> to vector<4x256xf32>
    %cst = arith.constant 1.000000e+00 : f32
    %2 = vector.broadcast %cst : f32 to vector<256x1xf32>
    %cst_2 = arith.constant dense<0.000000e+00> : vector<4x1xf32>
    %3 = tpu.matmul %1, %2, %cst_2 {dimension_numbers = #tpu.dot_dimension_numbers<[1], [0], [0], [1], [0, 0, 1, 1], [], []>} : vector<4x256xf32>, vector<256x1xf32>, vector<4x1xf32> -> vector<4x1xf32>
    %cst_3 = arith.constant 3.906250e-03 : f32
    %4 = vector.broadcast %cst_3 : f32 to vector<4x1xf32>
    %5 = arith.mulf %3, %4 : vector<4x1xf32>
    %c0_4 = arith.constant 0 : index
    %c0_5 = arith.constant 0 : index
    %6 = vector.load %arg2[%c0_4, %c0_5] : memref<4x4xf32, #tpu.memory_space<vmem>>, vector<4x4xf32>
    %c0_6 = arith.constant 0 : index
    %c0_7 = arith.constant 0 : index
    %7 = vector.load %arg3[%c0_6, %c0_7] : memref<4x4xf32, #tpu.memory_space<vmem>>, vector<4x4xf32>
    %cst_8 = arith.constant dense<0.000000e+00> : vector<4x1xf32>
    %8 = tpu.matmul %6, %5, %cst_8 {dimension_numbers = #tpu.dot_dimension_numbers<[1], [0], [0], [1], [0, 0, 1, 1], [], []>} : vector<4x4xf32>, vector<4x1xf32>, vector<4x1xf32> -> vector<4x1xf32>
    %cst_9 = arith.constant 0.000000e+00 : f32
    %9 = vector.broadcast %cst_9 : f32 to vector<4x1xf32>
    %10 = arith.maximumf %8, %9 : vector<4x1xf32>
    %cst_10 = arith.constant dense<0.000000e+00> : vector<4x1xf32>
    %11 = tpu.matmul %7, %10, %cst_10 {dimension_numbers = #tpu.dot_dimension_numbers<[1], [0], [0], [1], [0, 0, 1, 1], [], []>} : vector<4x4xf32>, vector<4x1xf32>, vector<4x1xf32> -> vector<4x1xf32>
    %12 = arith.negf %11 : vector<4x1xf32>
    %13 = math.exp %12 : vector<4x1xf32>
    %cst_11 = arith.constant 1.000000e+00 : f32
    %14 = vector.broadcast %cst_11 : f32 to vector<4x1xf32>
    %15 = arith.addf %14, %13 : vector<4x1xf32>
    %16 = arith.divf %14, %15 : vector<4x1xf32>
    %17 = vector.broadcast %16 : vector<4x1xf32> to vector<4x256xf32>
    %18 = arith.mulf %1, %17 : vector<4x256xf32>
    %c0_12 = arith.constant 0 : index
    %c0_13 = arith.constant 0 : index
    %c0_14 = arith.constant 0 : index
    %19 = vector.load %arg4[%c0_12, %c0_13, %c0_14] : memref<1x4x256xf32, #tpu.memory_space<vmem>>, vector<1x4x256xf32>
    %20 = vector.shape_cast %19 : vector<1x4x256xf32> to vector<4x256xf32>
    %21 = vector.shape_cast %18 : vector<4x256xf32> to vector<1x4x256xf32>
    tpu.vector_store %arg4[%c0_12, %c0_13, %c0_14], %21 {strides = array<i32>} : memref<1x4x256xf32, #tpu.memory_space<vmem>>, vector<1x4x256xf32>,
    return
  }
  func.func @transform_0(%arg0: i32) -> (i32, i32, i32) {
    %c0_i32 = arith.constant 0 : i32
    %c0_i32_0 = arith.constant 0 : i32
    %c0_i32_1 = arith.constant 0 : i32
    return %arg0, %c0_i32, %c0_i32_0 : i32, i32, i32
  }
  func.func @transform_1(%arg0: i32) -> (i32, i32) {
    %c0_i32 = arith.constant 0 : i32
    %c0_i32_0 = arith.constant 0 : i32
    %c0_i32_1 = arith.constant 0 : i32
    return %c0_i32, %c0_i32_0 : i32, i32
  }
  func.func @transform_2(%arg0: i32) -> (i32, i32) {
    %c0_i32 = arith.constant 0 : i32
    %c0_i32_0 = arith.constant 0 : i32
    %c0_i32_1 = arith.constant 0 : i32
    return %c0_i32, %c0_i32_0 : i32, i32
  }
  func.func @transform_3(%arg0: i32) -> (i32, i32, i32) {
    %c0_i32 = arith.constant 0 : i32
    %c0_i32_0 = arith.constant 0 : i32
    %c0_i32_1 = arith.constant 0 : i32
    return %arg0, %c0_i32, %c0_i32_0 : i32, i32, i32
  }
}

</mosaic_0001>

<bundles_post_ra>
// kernel: se_layer_2d.1
= control target key start
LH: loop header
LB: loop body
LE: loop exit
PB: predicated region body
PF: predicated region fallthrough
CT: control target
= control target key end

     0   :  { %s613_s12 = smov 0   ;;  %s643_s0 = inlined_call_operand.vmem [shape: f32[2,4,256], index: 0, kind: input, shape index: {}]   ;;  %s644_s1 = inlined_call_operand.vmem [shape: f32[4,4], index: 1, kind: input, shape index: {}]   ;;  %s645_s2 = inlined_call_operand.vmem [shape: f32[4,4], index: 2, kind: input, shape index: {}]   ;;  %s646_s3 = inlined_call_operand.vmem [shape: f32[2,4,256], index: 3, kind: output, shape index: {}]  }
   0x1 LB: > { %s478_s13 = sadd.s32 4294967295, %s586_s12   ;;  %p482_p0 = scmp.ge.s32.totalorder %s586_s12, 1  ;;  %s586_s12 = sphi %s613_s12, %s13_s12  }
   0x2   : > { %p137_p1 = scmp.lt.s32.totalorder %s586_s12, 3 }
   0x4   : > { %p138_p2 = pnand %p482_p0, %p137_p1 }
   0x5   : > { %p161_p3 = scmp.lt.s32.totalorder (!%p138_p2), %s478_s13, 1  ;;  %v588_v0 = vmov (!%p138_p2), 1.0|1.0   ;;  %v589_v3 = vmov (!%p138_p2), 0.0   ;;  %vm590_vm0 = vmmov (!%p138_p2), 0   ;;  %vm252_vm1 = vcmask (!%p138_p2), 1043456  }
   0x6   : > { %141 = sbr.rel (%p138_p2) target bundleno = 842 (0x34a), region = 32  ;;  %545 = vmatprep.subr.bf16.mxu0 (!%p138_p2), %v588_v0  ;;  %535 = vmatprep.subr.mxu1 (!%p138_p2), %v589_v3  ;;  %v246_v8 = vld [vmem:[%s644_s1] sm:$0xf] (!%p138_p2)  ;;  %vm248_vm2 = vcmask (!%p138_p2), 31744   ;;  %v591_v13 = vmov (!%p138_p2), 0   ;;  %v416_v22 = vlaneseq (!%p138_p2) }
   0x7   : > { %546 = vmatpush3.bf16.msra.mxu0 (!%p138_p2), %v588_v0  ;;  %537 = vmatprep.mubr.msk.f32.mxu1 (!%p138_p2), %vm590_vm0, %v589_v3  ;;  %v247_v12 = vld [vmem:[%s645_s2] sm:$0xf] (!%p138_p2)  ;;  %v592_v20 = vmov (!%p138_p2), 839922192  }
   0x8   : > { %547 = vmatprep.subr.bf16.mxu0 (!%p138_p2), %v588_v0  ;;  %574 = vset.pattern.permute.xlu0 (!%p138_p2), %v591_v13  ;;  %v414_v21 = vunpack.c.l.s4 (!%p138_p2), %v592_v20  ;;  %v417_v24 = vshrl.u32 (!%p138_p2), %v416_v22, 7 }
   0xa   : > { %v415_v23 = vunpack.c.0.s8 (!%p138_p2), %v414_v21 }
   0xb   : > { %548 = vmatpush3.bf16.msra.mxu0 (!%p138_p2), %v588_v0 }
   0xc   : > { %549 = vmatprep.subr.bf16.mxu0 (!%p138_p2), %v588_v0  ;;  %v418_v25 = vsub.s32 (!%p138_p2), %v415_v23, %v417_v24 }
   0xd   : > { %s648_s13 = smov (!%p161_p3, %s478_s13), 1 }
   0xe   : > { %s494_s14 = sshll.u32 %s648_s13, 3 }
   0xf   : > { %s165_s17 = scalar_lea.vmem %s643_s0, %s494_s14  ;;  %550 = vmatpush3.bf16.msra.mxu0 %v588_v0  ;;  %s170_s24 = scalar_lea.vmem %s646_s3, %s494_s14 }
  0x10   : > { %v171_v1 = vld [vmem:[%s165_s17] sm:$0xff]  ;;  %551 = vmatprep.subr.bf16.mxu0 %v588_v0 }
  0x11   : > { %v173_v2 = vcombine.high %v171_v1, %v171_v1 }
  0x13   : > { %239 = vmatprep.mubr.f32.mxu0 %v173_v2  ;;  %552 = vmatpush3.bf16.msra.mxu0 %v588_v0 }
  0x14   : > { %553 = vmatprep.subr.bf16.mxu0 %v588_v0 }
  0x17   : > { %554 = vmatpush3.bf16.msra.mxu0 %v588_v0 }
  0x18   : > { %555 = vmatprep.subr.bf16.mxu0 %v588_v0 }
  0x1b   : > { %556 = vmatpush3.bf16.msra.mxu0 %v588_v0 }
  0x1c   : > { %557 = vmatprep.subr.bf16.mxu0 %v588_v0 }
  0x1f   : > { %558 = vmatpush3.bf16.msra.mxu0 %v588_v0 }
  0x20   : > { %559 = vmatprep.subr.bf16.mxu0 %v588_v0 }
  0x23   : > { %560 = vmatpush3.bf16.msra.mxu0 %v588_v0 }
  0x26   : > { %240 = vmatmul.mubr.f32.vlgmr.msra.gmra.mrb[0].mxu0 %v171_v1 }
  0xf9   : > { %v528_v4 = vpop.f32.mrb[0].mxu0 }
  0xfa   : > { %v529_v5 = vpop.f32.mrb[1].mxu0 }
  0xfb   : > { %v530_v6 = vadd.f32 %v529_v5, %v528_v4 }
  0xfd   : > { %v245_v7 = vmul.f32 0.00390625, %v530_v6 }
  0xff   : > { %536 = vmatpush3.msk.msra.mxu1 %vm252_vm1, %v245_v7 }
 0x100   : > { %538 = vmatmul.mubr.msk.f32.vlgmr.msra.gmra.mrb[0].mxu1 %vm248_vm2, %v246_v8  ;;  %540 = vmatprep.subr.mxu1 %v589_v3 }
 0x101   : > { %542 = vmatprep.mubr.msk.f32.mxu1 %vm590_vm0, %v589_v3 }
 0x1d3   : > { %v322_v9 = vpop.f32.mrb[0].mxu1 }
 0x1d4   : > { %v326_v10 = vmax.f32 %v322_v9, 0.0  ;;  %v539_v11 = vpop.f32.mrb[1].mxu1 }
 0x1d6   : > { %541 = vmatpush3.msk.msra.mxu1 %vm252_vm1, %v326_v10 }
 0x1d7   : > { %543 = vmatmul.mubr.msk.f32.vlgmr.msra.gmra.mrb[2].mxu1 %vm248_vm2, %v247_v12 }
 0x2aa   : > { %v399_v14 = vpop.f32.mrb[2].mxu1 }
 0x2ab   : > { %v491_v15 = vmul.f32 -1.442695, %v399_v14  ;;  %v544_v16 = vpop.f32.mrb[3].mxu1 }
 0x2ad   : > { %576 = vpow2.f32 %v491_v15 }
 0x2b7   : > { %v577_v17 = vpop.eup %576 }
 0x2b8   : > { %v406_v18 = vadd.f32 1.0, %v577_v17 }
 0x2ba   : > { %578 = vrcp.f32 %v406_v18 }
 0x2c4   : > { %v579_v19 = vpop.eup %578 }
 0x2c5   : > { %411 = vperm.xlu0 %574, %v579_v19  }
 0x344   : > { %v412_v26 = vpop.permute.xlu0 %411 }
 0x345   : > { %v419_v27 = vrot.slane %v412_v26, %v418_v25 }
 0x347   : > { %v421_v28 = vmul.f32 %v419_v27, %v171_v1 }
 0x349   : > { %422 = vst [vmem:[%s170_s24] sm:$0xff] %v421_v28 }
 0x34a PF: > { %s13_s12 = sadd.s32 1, %s586_s12  }
 0x34b   : > { %p10_p4 = scmp.ge.s32.totalorder %s13_s12, 4  }
 0x34d   :  { %12 = sbr.rel (!%p10_p4) target bundleno = 1 (0x1), region = 62 }

</bundles_post_ra>
